<compile_context>
chip_gen: v6e
topology: v6e:2x2x1
jax: 0.10.0
libtpu: 0.0.40
codegen_flags: <defaults>
</compile_context>

<pallas_src>
import jax
import jax.numpy as jnp
from jax.experimental import pallas as pl
from jax.experimental.pallas import tpu as pltpu


def linear_kernel(x_ref, w_ref, b_ref, o_ref):
    # x_ref: (tb, K) f32, w_ref: (K, N) bf16, b_ref: (1, N) f32, o_ref: (tb, N) f32
    acc = jnp.dot(x_ref[...].astype(jnp.bfloat16), w_ref[...],
                  preferred_element_type=jnp.float32)
    o_ref[...] = acc + b_ref[...]


def prepare_params(weight, bias):
    """One-time parameter prep (NOT in the per-call hot path).

    weight: torch-layout (out=1000, in=512) f32; bias: (1000,) f32.
    Returns (w_t (K, N) bf16, b_row (1, N) f32).
    """
    w_t = weight.T.astype(jnp.bfloat16)            # (K, N), transposed + cast once
    b_row = bias.astype(jnp.float32).reshape(1, -1)
    return w_t, b_row


# Conservative no-grid VMEM budget (safe under every generation's default
# scoped-VMEM limit: v5e 16 MiB, v6e/v7x 32 MiB — and v7x's 64 MiB physical).
_NO_GRID_VMEM_BUDGET = 8 * 1024 * 1024


def _make_linear_call(B, K, N):
    cost = pl.CostEstimate(
        flops=2 * B * K * N,
        transcendentals=0,
        bytes_accessed=B * K * 4 + K * N * 2 + N * 4 + B * N * 4,
    )
    vmem_bytes = B * K * 4 + K * N * 2 + N * 4 + B * N * 4

    if vmem_bytes <= _NO_GRID_VMEM_BUDGET:
        # Small-batch path (B=2 here): no grid, one VMEM-resident block.
        # The weight-streaming DMA is the critical path; adding grid steps
        # only adds ~0.35 us/step of overhead with no compute to hide.
        return pl.pallas_call(
            linear_kernel,
            out_shape=jax.ShapeDtypeStruct((B, N), jnp.float32),
            in_specs=[
                pl.BlockSpec(memory_space=pltpu.MemorySpace.VMEM),
                pl.BlockSpec(memory_space=pltpu.MemorySpace.VMEM),
                pl.BlockSpec(memory_space=pltpu.MemorySpace.VMEM),
            ],
            out_specs=pl.BlockSpec(memory_space=pltpu.MemorySpace.VMEM),
            cost_estimate=cost,
        )

    # Large-batch fallback: tile B ("parallel"), keep weight/bias resident.
    tb = 256                                        # multiple of 8 (f32 sublane)
    return pl.pallas_call(
        linear_kernel,
        out_shape=jax.ShapeDtypeStruct((B, N), jnp.float32),
        grid=(pl.cdiv(B, tb),),
        in_specs=[
            pl.BlockSpec((tb, K), lambda i: (i, 0)),
            pl.BlockSpec((K, N), lambda i: (0, 0)),
            pl.BlockSpec((1, N), lambda i: (0, 0)),
        ],
        out_specs=pl.BlockSpec((tb, N), lambda i: (i, 0)),
        compiler_params=pltpu.CompilerParams(
            dimension_semantics=("parallel",)),
        cost_estimate=cost,
    )


def test_model_forward(x, w_t, b_row):
    """x: (B, C, H, W) f32; w_t: (K, N) bf16; b_row: (1, N) f32."""
    B = x.shape[0]
    x_flat = x.reshape(B, -1)                       # row-major == torch.flatten(x, 1)
    K = x_flat.shape[1]
    N = w_t.shape[1]
    call = _make_linear_call(B, K, N)
    return call(x_flat, w_t, b_row)


if __name__ == "__main__":
    key = jax.random.PRNGKey(0)
    kx, kw, kb = jax.random.split(key, 3)

    # Small input whose flatten(dim=1) yields 512 features: (2, 2, 16, 16)
    B, C, H, W = 2, 2, 16, 16
    x = jax.random.normal(kx, (B, C, H, W), dtype=jnp.float32)

    # Deterministic Linear(512, 1000) params (torch convention: weight (out, in))
    in_features, out_features = C * H * W, 1000
    bound = 1.0 / (in_features ** 0.5)
    weight = jax.random.uniform(kw, (out_features, in_features),
                                dtype=jnp.float32, minval=-bound, maxval=bound)
    bias = jax.random.uniform(kb, (out_features,),
                              dtype=jnp.float32, minval=-bound, maxval=bound)

    # One-time parameter prep (transpose + bf16 cast hoisted out of hot path).
    w_t, b_row = prepare_params(weight, bias)
    jax.block_until_ready((w_t, b_row))

    y = test_model_forward(x, w_t, b_row)
    jax.block_until_ready(y)

    # Correctness checks.
    assert y.shape == (B, out_features)
    # Full-f32 reference (torch semantics); bf16 weights/activations => loose tol.
    ref_f32 = x.reshape(B, -1) @ weight.T + bias
    assert jnp.allclose(y, ref_f32, atol=2e-2, rtol=2e-2)
    # bf16-consistent reference => tight tol (f32 accumulation on MXU).
    xq = x.reshape(B, -1).astype(jnp.bfloat16).astype(jnp.float32)
    wq = weight.astype(jnp.bfloat16).astype(jnp.float32)
    ref_bf16 = xq @ wq.T + bias
    assert jnp.allclose(y, ref_bf16, atol=1e-4, rtol=1e-4)

    print("KERNEL_OK")
</pallas_src>

<mosaic_0001>
module attributes {stable_mosaic.version = 11 : i64} {
  func.func @linear_kernel(%arg0: memref<2x512xf32, #tpu.memory_space<vmem>>, %arg1: memref<512x1000xbf16, #tpu.memory_space<vmem>>, %arg2: memref<1x1000xf32, #tpu.memory_space<vmem>>, %arg3: memref<2x1000xf32, #tpu.memory_space<vmem>>) attributes {dimension_semantics = [], scalar_prefetch = 0 : i64, scratch_operands = 0 : i64, tpu.core_type = #tpu.core_type<tc>} {
    %c0 = arith.constant 0 : index
    %c0_0 = arith.constant 0 : index
    %0 = vector.load %arg0[%c0, %c0_0] : memref<2x512xf32, #tpu.memory_space<vmem>>, vector<2x512xf32>
    %1 = arith.truncf %0 : vector<2x512xf32> to vector<2x512xbf16>
    %c0_1 = arith.constant 0 : index
    %c0_2 = arith.constant 0 : index
    %2 = vector.load %arg1[%c0_1, %c0_2] : memref<512x1000xbf16, #tpu.memory_space<vmem>>, vector<512x1000xbf16>
    %cst = arith.constant dense<0.000000e+00> : vector<2x1000xf32>
    %3 = tpu.matmul %1, %2, %cst {dimension_numbers = #tpu.dot_dimension_numbers<[1], [0], [0], [1], [0, 0, 1, 1], [], []>} : vector<2x512xbf16>, vector<512x1000xbf16>, vector<2x1000xf32> -> vector<2x1000xf32>
    %c0_3 = arith.constant 0 : index
    %c0_4 = arith.constant 0 : index
    %4 = vector.load %arg2[%c0_3, %c0_4] : memref<1x1000xf32, #tpu.memory_space<vmem>>, vector<1x1000xf32>
    %5 = vector.broadcast %4 : vector<1x1000xf32> to vector<2x1000xf32>
    %6 = arith.addf %3, %5 : vector<2x1000xf32>
    %c0_5 = arith.constant 0 : index
    %c0_6 = arith.constant 0 : index
    %7 = vector.load %arg3[%c0_5, %c0_6] : memref<2x1000xf32, #tpu.memory_space<vmem>>, vector<2x1000xf32>
    tpu.vector_store %arg3[%c0_5, %c0_6], %6 {strides = array<i32>} : memref<2x1000xf32, #tpu.memory_space<vmem>>, vector<2x1000xf32>,
    return
  }
}

</mosaic_0001>

<bundles_post_ra>
// kernel: tpu_custom_call.1
= control target key start
LH: loop header
LB: loop body
LE: loop exit
PB: predicated region body
PF: predicated region fallthrough
CT: control target
= control target key end

     0   :  { %v2296_v32 = vmov 1983009808   ;;  %v21_v34 = vlaneseq  ;;  %s3160_s0 = inlined_call_operand.vmem [shape: f32[2,512], index: 0, kind: input, shape index: {}]   ;;  %s3161_s1 = inlined_call_operand.vmem [shape: bf16[512,1000], index: 1, kind: input, shape index: {}]   ;;  %s3162_s2 = inlined_call_operand.vmem [shape: f32[1,1000], index: 2, kind: input, shape index: {}]   ;;  %s3163_s3 = inlined_call_operand.hbm [shape: f32[2,1000], index: 3, kind: output, shape index: {}]  }
   0x1   :  { %v98_v0 = vld [vmem:[%s3161_s1 + $0x1c0] sm:$0xff]  ;;  %v19_v33 = vunpack.c.l.s4 %v2296_v32 }
   0x2   :  { %v102_v1 = vld [vmem:[%s3161_s1 + $0x1e0] sm:$0xff]  ;;  %v2384_v44 = vshrl.u32 %v21_v34, 7 }
   0x3   :  { %v226_v2 = vld [vmem:[%s3161_s1 + $0x5c0] sm:$0xff]  ;;  %v2072_v3 = vcombine.high %v98_v0, %v102_v1  ;;  %v2071_v5 = vcombine.low %v98_v0, %v102_v1  ;;  %v20_v43 = vunpack.c.0.s8 %v19_v33 }
   0x4   :  { %v230_v4 = vld [vmem:[%s3161_s1 + $0x5e0] sm:$0xff] }
   0x5   :  { %v90_v6 = vld [vmem:[%s3161_s1 + $0x180] sm:$0xff]  ;;  %v2200_v8 = vcombine.high %v226_v2, %v230_v4  ;;  %v2199_v9 = vcombine.low %v226_v2, %v230_v4  ;;  %1620 = vmatprep.subr.bf16.mxu0 %v2072_v3  ;;  %v2399_v53 = vsub.s32 %v20_v43, %v2384_v44 }
   0x6   :  { %v94_v7 = vld [vmem:[%s3161_s1 + $0x1a0] sm:$0xff]  ;;  %1621 = vmatpush1.bf16.msra.mxu0 %v2071_v5 }
   0x7   :  { %v2064_v10 = vcombine.high %v90_v6, %v94_v7  ;;  %v218_v11 = vld [vmem:[%s3161_s1 + $0x580] sm:$0xff]  ;;  %1661 = vmatprep.subr.bf16.mxu1 %v2200_v8  ;;  %v2063_v18 = vcombine.low %v90_v6, %v94_v7 }
   0x8   :  { %v222_v12 = vld [vmem:[%s3161_s1 + $0x5a0] sm:$0xff]  ;;  %1662 = vmatpush1.bf16.msra.mxu1 %v2199_v9 }
   0x9   :  { %v82_v13 = vld [vmem:[%s3161_s1 + $0x140] sm:$0xff]  ;;  %v2192_v14 = vcombine.high %v218_v11, %v222_v12  ;;  %1622 = vmatprep.subr.bf16.mxu0 %v2064_v10  ;;  %v2191_v19 = vcombine.low %v218_v11, %v222_v12 }
   0xa   :  { %v86_v15 = vld [vmem:[%s3161_s1 + $0x160] sm:$0xff]  ;;  %1623 = vmatpush1.bf16.msra.mxu0 %v2063_v18 }
   0xb   :  { %v210_v16 = vld [vmem:[%s3161_s1 + $0x540] sm:$0xff]  ;;  %v2056_v20 = vcombine.high %v82_v13, %v86_v15  ;;  %1663 = vmatprep.subr.bf16.mxu1 %v2192_v14  ;;  %v2055_v26 = vcombine.low %v82_v13, %v86_v15 }
   0xc   :  { %v214_v17 = vld [vmem:[%s3161_s1 + $0x560] sm:$0xff]  ;;  %1664 = vmatpush1.bf16.msra.mxu1 %v2191_v19 }
   0xd   :  { %v2184_v21 = vcombine.high %v210_v16, %v214_v17  ;;  %v74_v22 = vld [vmem:[%s3161_s1 + $0x100] sm:$0xff]  ;;  %1624 = vmatprep.subr.bf16.mxu0 %v2056_v20  ;;  %v2183_v27 = vcombine.low %v210_v16, %v214_v17 }
   0xe   :  { %v78_v23 = vld [vmem:[%s3161_s1 + $0x120] sm:$0xff]  ;;  %1625 = vmatpush1.bf16.msra.mxu0 %v2055_v26 }
   0xf   :  { %v202_v24 = vld [vmem:[%s3161_s1 + $0x500] sm:$0xff]  ;;  %v2048_v28 = vcombine.high %v74_v22, %v78_v23  ;;  %1665 = vmatprep.subr.bf16.mxu1 %v2184_v21  ;;  %v2047_v37 = vcombine.low %v74_v22, %v78_v23 }
  0x10   :  { %v206_v25 = vld [vmem:[%s3161_s1 + $0x520] sm:$0xff]  ;;  %1666 = vmatpush1.bf16.msra.mxu1 %v2183_v27 }
  0x11   :  { %v2176_v29 = vcombine.high %v202_v24, %v206_v25  ;;  %v66_v30 = vld [vmem:[%s3161_s1 + $0xc0] sm:$0xff]  ;;  %1626 = vmatprep.subr.bf16.mxu0 %v2048_v28  ;;  %v2175_v38 = vcombine.low %v202_v24, %v206_v25 }
  0x12   :  { %v70_v31 = vld [vmem:[%s3161_s1 + $0xe0] sm:$0xff]  ;;  %1627 = vmatpush1.bf16.msra.mxu0 %v2047_v37 }
  0x13   :  { %v194_v35 = vld [vmem:[%s3161_s1 + $0x4c0] sm:$0xff]  ;;  %v2040_v39 = vcombine.high %v66_v30, %v70_v31  ;;  %1667 = vmatprep.subr.bf16.mxu1 %v2176_v29  ;;  %v2039_v47 = vcombine.low %v66_v30, %v70_v31 }
  0x14   :  { %v198_v36 = vld [vmem:[%s3161_s1 + $0x4e0] sm:$0xff]  ;;  %1668 = vmatpush1.bf16.msra.mxu1 %v2175_v38 }
  0x15   :  { %v2168_v40 = vcombine.high %v194_v35, %v198_v36  ;;  %v58_v41 = vld [vmem:[%s3161_s1 + $0x80] sm:$0xff]  ;;  %1628 = vmatprep.subr.bf16.mxu0 %v2040_v39  ;;  %v2167_v48 = vcombine.low %v194_v35, %v198_v36 }
  0x16   :  { %v62_v42 = vld [vmem:[%s3161_s1 + $0xa0] sm:$0xff]  ;;  %1629 = vmatpush1.bf16.msra.mxu0 %v2039_v47 }
  0x17   :  { %v186_v45 = vld [vmem:[%s3161_s1 + $0x480] sm:$0xff]  ;;  %v2032_v49 = vcombine.high %v58_v41, %v62_v42  ;;  %1669 = vmatprep.subr.bf16.mxu1 %v2168_v40  ;;  %v2031_v56 = vcombine.low %v58_v41, %v62_v42 }
  0x18   :  { %v190_v46 = vld [vmem:[%s3161_s1 + $0x4a0] sm:$0xff]  ;;  %1670 = vmatpush1.bf16.msra.mxu1 %v2167_v48 }
  0x19   :  { %v2160_v50 = vcombine.high %v186_v45, %v190_v46  ;;  %v50_v51 = vld [vmem:[%s3161_s1 + $0x40] sm:$0xff]  ;;  %1630 = vmatprep.subr.bf16.mxu0 %v2032_v49  ;;  %v2159_v57 = vcombine.low %v186_v45, %v190_v46 }
  0x1a   :  { %v54_v52 = vld [vmem:[%s3161_s1 + $0x60] sm:$0xff]  ;;  %1631 = vmatpush1.bf16.msra.mxu0 %v2031_v56 }
  0x1b   :  { %v178_v54 = vld [vmem:[%s3161_s1 + $0x440] sm:$0xff]  ;;  %v2024_v58 = vcombine.high %v50_v51, %v54_v52  ;;  %1671 = vmatprep.subr.bf16.mxu1 %v2160_v50  ;;  %v2023_v3 = vcombine.low %v50_v51, %v54_v52 }
  0x1c   :  { %v182_v55 = vld [vmem:[%s3161_s1 + $0x460] sm:$0xff]  ;;  %1672 = vmatpush1.bf16.msra.mxu1 %v2159_v57 }
  0x1d   :  { %v15_v59 = vld [vmem:[%s3160_s0] sm:$0xff]  ;;  %v2152_v60 = vcombine.high %v178_v54, %v182_v55  ;;  %1632 = vmatprep.subr.bf16.mxu0 %v2024_v58  ;;  %v2151_v6 = vcombine.low %v178_v54, %v182_v55 }
  0x1e   :  { %v42_v61 = vld [vmem:[%s3161_s1] sm:$0xff]  ;;  %v2417_v63 = vrot.slane %v15_v59, %v2399_v53  ;;  %v17_v0 = vcombine.high %v15_v59, %v15_v59  ;;  %1633 = vmatpush1.bf16.msra.mxu0 %v2023_v3 }
  0x1f   :  { %v46_v62 = vld [vmem:[%s3161_s1 + $0x20] sm:$0xff]  ;;  %1673 = vmatprep.subr.bf16.mxu1 %v2152_v60 }
  0x20   :  { %v170_v1 = vld [vmem:[%s3161_s1 + $0x400] sm:$0xff]  ;;  %v32_v4 = vcombine.high %v2417_v63, %v2417_v63  ;;  %v2428_v5 = vrot.slane %v17_v0, %v2399_v53  ;;  %v2016_v7 = vcombine.high %v42_v61, %v46_v62  ;;  %v2015_v15 = vcombine.low %v42_v61, %v46_v62  ;;  %1674 = vmatpush1.bf16.msra.mxu1 %v2151_v6 }
  0x21   :  { %v174_v2 = vld [vmem:[%s3161_s1 + $0x420] sm:$0xff] }
  0x22   :  { %v2144_v8 = vcombine.high %v170_v1, %v174_v2  ;;  %v162_v9 = vld [vmem:[%s3161_s1 + $0x3c0] sm:$0xff]  ;;  %v2436_v11 = vpack.c.bf16 %v32_v4, %v32_v4  ;;  %v33_v12 = vcombine.high %v2428_v5, %v2428_v5  ;;  %1634 = vmatprep.subr.bf16.mxu0 %v2016_v7  ;;  %v2143_v17 = vcombine.low %v170_v1, %v174_v2 }
  0x23   :  { %v166_v10 = vld [vmem:[%s3161_s1 + $0x3e0] sm:$0xff]  ;;  %1635 = vmatpush1.bf16.msra.mxu0 %v2015_v15 }
  0x24   :  { %v290_v13 = vld [vmem:[%s3161_s1 + $0x7c0] sm:$0xff]  ;;  %1652 = vmatprep.mubr.bf16.mxu0 %v2436_v11  ;;  %v2447_v16 = vpack.c.bf16 %v33_v12, %v33_v12  ;;  %v2136_v18 = vcombine.high %v162_v9, %v166_v10  ;;  %1675 = vmatprep.subr.bf16.mxu1 %v2144_v8  ;;  %v2135_v24 = vcombine.low %v162_v9, %v166_v10 }
  0x25   :  { %v294_v14 = vld [vmem:[%s3161_s1 + $0x7e0] sm:$0xff]  ;;  %1676 = vmatpush1.bf16.msra.mxu1 %v2143_v17 }
  0x26   :  { %v2264_v19 = vcombine.high %v290_v13, %v294_v14  ;;  %v154_v20 = vld [vmem:[%s3161_s1 + $0x380] sm:$0xff]  ;;  %1693 = vmatprep.mubr.bf16.mxu1 %v2447_v16  ;;  %1636 = vmatprep.subr.bf16.mxu0 %v2136_v18  ;;  %v2263_v25 = vcombine.low %v290_v13, %v294_v14  ;;  %v99_v18 = vld [vmem:[%s3161_s1 + $0x1c8] sm:$0xff] }
  0x27   :  { %v158_v21 = vld [vmem:[%s3161_s1 + $0x3a0] sm:$0xff]  ;;  %1637 = vmatpush2.bf16.msra.mxu0 %v2135_v24 }
  0x28   :  { %v282_v22 = vld [vmem:[%s3161_s1 + $0x780] sm:$0xff]  ;;  %v2128_v26 = vcombine.high %v154_v20, %v158_v21  ;;  %1677 = vmatprep.subr.bf16.mxu1 %v2264_v19  ;;  %v2127_v32 = vcombine.low %v154_v20, %v158_v21  ;;  %v103_v19 = vld [vmem:[%s3161_s1 + $0x1e8] sm:$0xff] }
  0x29   :  { %v286_v23 = vld [vmem:[%s3161_s1 + $0x7a0] sm:$0xff]  ;;  %1678 = vmatpush2.bf16.msra.mxu1 %v2263_v25  ;;  %v227_v20 = vld [vmem:[%s3161_s1 + $0x5c8] sm:$0xff]  ;;  %v2074_v24 = vcombine.high %v99_v18, %v103_v19 }
  0x2a   :  { %v2256_v27 = vcombine.high %v282_v22, %v286_v23  ;;  %v146_v28 = vld [vmem:[%s3161_s1 + $0x340] sm:$0xff]  ;;  %1638 = vmatprep.subr.bf16.mxu0 %v2128_v26  ;;  %v2255_v33 = vcombine.low %v282_v22, %v286_v23  ;;  %v231_v21 = vld [vmem:[%s3161_s1 + $0x5e8] sm:$0xff] }
  0x2b   :  { %v150_v29 = vld [vmem:[%s3161_s1 + $0x360] sm:$0xff]  ;;  %1639 = vmatpush2.bf16.msra.mxu0 %v2127_v32  ;;  %v2202_v25 = vcombine.high %v227_v20, %v231_v21  ;;  %v91_v26 = vld [vmem:[%s3161_s1 + $0x188] sm:$0xff]  ;;  %v2073_v32 = vcombine.low %v99_v18, %v103_v19 }
  0x2c   :  { %v274_v30 = vld [vmem:[%s3161_s1 + $0x740] sm:$0xff]  ;;  %v2120_v34 = vcombine.high %v146_v28, %v150_v29  ;;  %1679 = vmatprep.subr.bf16.mxu1 %v2256_v27  ;;  %v2119_v40 = vcombine.low %v146_v28, %v150_v29  ;;  %v95_v27 = vld [vmem:[%s3161_s1 + $0x1a8] sm:$0xff]  ;;  %v2554_v28 = vpack.c.bf16 %v2417_v63, %v2417_v63 }
  0x2d   :  { %v278_v31 = vld [vmem:[%s3161_s1 + $0x760] sm:$0xff]  ;;  %1680 = vmatpush2.bf16.msra.mxu1 %v2255_v33  ;;  %v219_v29 = vld [vmem:[%s3161_s1 + $0x588] sm:$0xff] }
  0x2e   :  { %v2248_v35 = vcombine.high %v274_v30, %v278_v31  ;;  %v138_v36 = vld [vmem:[%s3161_s1 + $0x300] sm:$0xff]  ;;  %1640 = vmatprep.subr.bf16.mxu0 %v2120_v34  ;;  %v2247_v41 = vcombine.low %v274_v30, %v278_v31  ;;  %v223_v30 = vld [vmem:[%s3161_s1 + $0x5a8] sm:$0xff]  ;;  %v2564_v31 = vpack.c.bf16 %v2428_v5, %v2428_v5 }
  0x2f   :  { %v142_v37 = vld [vmem:[%s3161_s1 + $0x320] sm:$0xff]  ;;  %1641 = vmatpush2.bf16.msra.mxu0 %v2119_v40 }
  0x30   :  { %v266_v38 = vld [vmem:[%s3161_s1 + $0x700] sm:$0xff]  ;;  %v2112_v42 = vcombine.high %v138_v36, %v142_v37  ;;  %1681 = vmatprep.subr.bf16.mxu1 %v2248_v35  ;;  %v2111_v49 = vcombine.low %v138_v36, %v142_v37 }
  0x31   :  { %v270_v39 = vld [vmem:[%s3161_s1 + $0x720] sm:$0xff]  ;;  %1682 = vmatpush2.bf16.msra.mxu1 %v2247_v41 }
  0x32   :  { %v2240_v43 = vcombine.high %v266_v38, %v270_v39  ;;  %v130_v45 = vld [vmem:[%s3161_s1 + $0x2c0] sm:$0xff]  ;;  %1642 = vmatprep.subr.bf16.mxu0 %v2112_v42  ;;  %v2239_v50 = vcombine.low %v266_v38, %v270_v39 }
  0x33   :  { %v134_v46 = vld [vmem:[%s3161_s1 + $0x2e0] sm:$0xff]  ;;  %1643 = vmatpush2.bf16.msra.mxu0 %v2111_v49 }
  0x34   :  { %v258_v47 = vld [vmem:[%s3161_s1 + $0x6c0] sm:$0xff]  ;;  %v2104_v51 = vcombine.high %v130_v45, %v134_v46  ;;  %1683 = vmatprep.subr.bf16.mxu1 %v2240_v43  ;;  %v2103_v58 = vcombine.low %v130_v45, %v134_v46 }
  0x35   :  { %v262_v48 = vld [vmem:[%s3161_s1 + $0x6e0] sm:$0xff]  ;;  %1684 = vmatpush2.bf16.msra.mxu1 %v2239_v50 }
  0x36   :  { %v2232_v52 = vcombine.high %v258_v47, %v262_v48  ;;  %v122_v54 = vld [vmem:[%s3161_s1 + $0x280] sm:$0xff]  ;;  %1644 = vmatprep.subr.bf16.mxu0 %v2104_v51  ;;  %v2231_v59 = vcombine.low %v258_v47, %v262_v48 }
  0x37   :  { %v126_v55 = vld [vmem:[%s3161_s1 + $0x2a0] sm:$0xff]  ;;  %1645 = vmatpush2.bf16.msra.mxu0 %v2103_v58 }
  0x38   :  { %v250_v56 = vld [vmem:[%s3161_s1 + $0x680] sm:$0xff]  ;;  %v2096_v60 = vcombine.high %v122_v54, %v126_v55  ;;  %1685 = vmatprep.subr.bf16.mxu1 %v2232_v52  ;;  %v2095_v3 = vcombine.low %v122_v54, %v126_v55 }
  0x39   :  { %v254_v57 = vld [vmem:[%s3161_s1 + $0x6a0] sm:$0xff]  ;;  %1686 = vmatpush2.bf16.msra.mxu1 %v2231_v59 }
  0x3a   :  { %v2224_v61 = vcombine.high %v250_v56, %v254_v57  ;;  %v114_v62 = vld [vmem:[%s3161_s1 + $0x240] sm:$0xff]  ;;  %1646 = vmatprep.subr.bf16.mxu0 %v2096_v60  ;;  %v2223_v4 = vcombine.low %v250_v56, %v254_v57 }
  0x3b   :  { %v118_v0 = vld [vmem:[%s3161_s1 + $0x260] sm:$0xff]  ;;  %1647 = vmatpush2.bf16.msra.mxu0 %v2095_v3 }
  0x3c   :  { %v242_v1 = vld [vmem:[%s3161_s1 + $0x640] sm:$0xff]  ;;  %v2088_v6 = vcombine.high %v114_v62, %v118_v0  ;;  %1687 = vmatprep.subr.bf16.mxu1 %v2224_v61  ;;  %v2087_v13 = vcombine.low %v114_v62, %v118_v0 }
  0x3d   :  { %v246_v2 = vld [vmem:[%s3161_s1 + $0x660] sm:$0xff]  ;;  %1688 = vmatpush2.bf16.msra.mxu1 %v2223_v4 }
  0x3e   :  { %v2216_v7 = vcombine.high %v242_v1, %v246_v2  ;;  %v106_v8 = vld [vmem:[%s3161_s1 + $0x200] sm:$0xff]  ;;  %1648 = vmatprep.subr.bf16.mxu0 %v2088_v6  ;;  %v2215_v14 = vcombine.low %v242_v1, %v246_v2 }
  0x3f   :  { %v110_v9 = vld [vmem:[%s3161_s1 + $0x220] sm:$0xff]  ;;  %1649 = vmatpush2.bf16.msra.mxu0 %v2087_v13 }
  0x40   :  { %v234_v10 = vld [vmem:[%s3161_s1 + $0x600] sm:$0xff]  ;;  %v2080_v15 = vcombine.high %v106_v8, %v110_v9  ;;  %1689 = vmatprep.subr.bf16.mxu1 %v2216_v7  ;;  %v2079_v22 = vcombine.low %v106_v8, %v110_v9 }
  0x41   :  { %v238_v12 = vld [vmem:[%s3161_s1 + $0x620] sm:$0xff]  ;;  %1690 = vmatpush2.bf16.msra.mxu1 %v2215_v14 }
  0x42   :  { %v2208_v17 = vcombine.high %v234_v10, %v238_v12  ;;  %1650 = vmatprep.subr.bf16.mxu0 %v2080_v15  ;;  %v2207_v23 = vcombine.low %v234_v10, %v238_v12 }
  0x43   :  { %1651 = vmatpush2.bf16.msra.mxu0 %v2079_v22 }
  0x44   :  { %1691 = vmatprep.subr.bf16.mxu1 %v2208_v17 }
  0x45   :  { %8 = vsyncpa [#allocation3], 0  ;;  %1692 = vmatpush2.bf16.msra.mxu1 %v2207_v23  ;;  %1702 = vmatprep.subr.bf16.mxu0 %v2074_v24  ;;  %v2201_v33 = vcombine.low %v227_v20, %v231_v21  ;;  %v2066_v63 = vcombine.high %v91_v26, %v95_v27  ;;  %v2194_v34 = vcombine.high %v219_v29, %v223_v30  ;;  %v83_v35 = vld [vmem:[%s3161_s1 + $0x148] sm:$0xff]  ;;  %vm1993_vm0 = vcmask 1041408  }
  0x46   :  { %1743 = vmatprep.subr.bf16.mxu1 %v2202_v25  ;;  %v87_v36 = vld [vmem:[%s3161_s1 + $0x168] sm:$0xff]  ;;  %1653 = vmatmul.mubr.bf16.vlgmr.msra.gmra.mxu0 %v2554_v28  ;;  %v2065_v38 = vcombine.low %v91_v26, %v95_v27  ;;  %v2193_v39 = vcombine.low %v219_v29, %v223_v30  ;;  %vm1994_vm1 = vcmask 1043458   ;;  %vm1996_vm3 = vcmask 1045508  }
  0x47   :  { %v211_v5 = vld [vmem:[%s3161_s1 + $0x548] sm:$0xff]  ;;  %1703 = vmatpush1.bf16.msra.mxu0 %v2073_v32  ;;  %v2058_v40 = vcombine.high %v83_v35, %v87_v36  ;;  %1734 = vmatprep.mubr.bf16.mxu0 %v2436_v11  ;;  %v2057_v47 = vcombine.low %v83_v35, %v87_v36  ;;  %vm1995_vm2 = vmor %vm1994_vm1, %vm1993_vm0  ;;  %vm1998_vm5 = vcmask 850950  }
  0x48   :  { %v215_v37 = vld [vmem:[%s3161_s1 + $0x568] sm:$0xff]  ;;  %1694 = vmatmul.mubr.bf16.vlgmr.msra.gmra.mxu1 %v2564_v31  ;;  %1704 = vmatprep.subr.bf16.mxu0 %v2066_v63  ;;  %vm1997_vm4 = vmor %vm1996_vm3, %vm1995_vm2 }
  0x49   :  { %1744 = vmatpush1.bf16.msra.mxu1 %v2201_v33  ;;  %v2186_v41 = vcombine.high %v211_v5, %v215_v37  ;;  %v75_v42 = vld [vmem:[%s3161_s1 + $0x108] sm:$0xff]  ;;  %1775 = vmatprep.mubr.bf16.mxu1 %v2447_v16  ;;  %v2185_v48 = vcombine.low %v211_v5, %v215_v37  ;;  %vm1999_vm6 = vmor %vm1998_vm5, %vm1997_vm4 }
  0x4a   :  { %1745 = vmatprep.subr.bf16.mxu1 %v2194_v34  ;;  %v79_v43 = vld [vmem:[%s3161_s1 + $0x128] sm:$0xff] }
  0x4b   :  { %v203_v45 = vld [vmem:[%s3161_s1 + $0x508] sm:$0xff]  ;;  %1705 = vmatpush1.bf16.msra.mxu0 %v2065_v38  ;;  %v2050_v49 = vcombine.high %v75_v42, %v79_v43  ;;  %v2049_v56 = vcombine.low %v75_v42, %v79_v43 }
  0x4c   :  { %v207_v46 = vld [vmem:[%s3161_s1 + $0x528] sm:$0xff]  ;;  %1706 = vmatprep.subr.bf16.mxu0 %v2058_v40 }
  0x4d   :  { %1746 = vmatpush1.bf16.msra.mxu1 %v2193_v39  ;;  %v2178_v50 = vcombine.high %v203_v45, %v207_v46  ;;  %v67_v51 = vld [vmem:[%s3161_s1 + $0xc8] sm:$0xff]  ;;  %v2177_v57 = vcombine.low %v203_v45, %v207_v46 }
  0x4e   :  { %1747 = vmatprep.subr.bf16.mxu1 %v2186_v41  ;;  %v71_v52 = vld [vmem:[%s3161_s1 + $0xe8] sm:$0xff] }
  0x4f   :  { %v195_v54 = vld [vmem:[%s3161_s1 + $0x4c8] sm:$0xff]  ;;  %1707 = vmatpush1.bf16.msra.mxu0 %v2057_v47  ;;  %v2042_v58 = vcombine.high %v67_v51, %v71_v52  ;;  %v2041_v1 = vcombine.low %v67_v51, %v71_v52 }
  0x50   :  { %v199_v55 = vld [vmem:[%s3161_s1 + $0x4e8] sm:$0xff]  ;;  %1708 = vmatprep.subr.bf16.mxu0 %v2050_v49 }
  0x51   :  { %1748 = vmatpush1.bf16.msra.mxu1 %v2185_v48  ;;  %v2170_v59 = vcombine.high %v195_v54, %v199_v55  ;;  %v59_v60 = vld [vmem:[%s3161_s1 + $0x88] sm:$0xff]  ;;  %v2169_v2 = vcombine.low %v195_v54, %v199_v55 }
  0x52   :  { %1749 = vmatprep.subr.bf16.mxu1 %v2178_v50  ;;  %v63_v61 = vld [vmem:[%s3161_s1 + $0xa8] sm:$0xff] }
  0x53   :  { %v187_v62 = vld [vmem:[%s3161_s1 + $0x488] sm:$0xff]  ;;  %1709 = vmatpush1.bf16.msra.mxu0 %v2049_v56  ;;  %v2034_v3 = vcombine.high %v59_v60, %v63_v61  ;;  %v2033_v10 = vcombine.low %v59_v60, %v63_v61 }
  0x54   :  { %v191_v0 = vld [vmem:[%s3161_s1 + $0x4a8] sm:$0xff]  ;;  %1710 = vmatprep.subr.bf16.mxu0 %v2042_v58 }
  0x55   :  { %1750 = vmatpush1.bf16.msra.mxu1 %v2177_v57  ;;  %v2162_v4 = vcombine.high %v187_v62, %v191_v0  ;;  %v51_v6 = vld [vmem:[%s3161_s1 + $0x48] sm:$0xff]  ;;  %v2161_v12 = vcombine.low %v187_v62, %v191_v0 }
  0x56   :  { %1751 = vmatprep.subr.bf16.mxu1 %v2170_v59  ;;  %v55_v7 = vld [vmem:[%s3161_s1 + $0x68] sm:$0xff] }
  0x57   :  { %v179_v8 = vld [vmem:[%s3161_s1 + $0x448] sm:$0xff]  ;;  %1711 = vmatpush1.bf16.msra.mxu0 %v2041_v1  ;;  %v2026_v13 = vcombine.high %v51_v6, %v55_v7  ;;  %v2025_v20 = vcombine.low %v51_v6, %v55_v7 }
  0x58   :  { %v183_v9 = vld [vmem:[%s3161_s1 + $0x468] sm:$0xff]  ;;  %1712 = vmatprep.subr.bf16.mxu0 %v2034_v3 }
  0x59   :  { %1752 = vmatpush1.bf16.msra.mxu1 %v2169_v2  ;;  %v2154_v14 = vcombine.high %v179_v8, %v183_v9  ;;  %v43_v15 = vld [vmem:[%s3161_s1 + $0x8] sm:$0xff]  ;;  %v2153_v21 = vcombine.low %v179_v8, %v183_v9 }
  0x5a   :  { %1753 = vmatprep.subr.bf16.mxu1 %v2162_v4  ;;  %v47_v17 = vld [vmem:[%s3161_s1 + $0x28] sm:$0xff] }
  0x5b   :  { %v171_v18 = vld [vmem:[%s3161_s1 + $0x408] sm:$0xff]  ;;  %1713 = vmatpush1.bf16.msra.mxu0 %v2033_v10  ;;  %v2018_v22 = vcombine.high %v43_v15, %v47_v17  ;;  %v2017_v29 = vcombine.low %v43_v15, %v47_v17 }
  0x5c   :  { %v175_v19 = vld [vmem:[%s3161_s1 + $0x428] sm:$0xff]  ;;  %1714 = vmatprep.subr.bf16.mxu0 %v2026_v13 }
  0x5d   :  { %1754 = vmatpush1.bf16.msra.mxu1 %v2161_v12  ;;  %v2146_v23 = vcombine.high %v171_v18, %v175_v19  ;;  %v163_v24 = vld [vmem:[%s3161_s1 + $0x3c8] sm:$0xff]  ;;  %v2145_v30 = vcombine.low %v171_v18, %v175_v19 }
  0x5e   :  { %1755 = vmatprep.subr.bf16.mxu1 %v2154_v14  ;;  %v167_v25 = vld [vmem:[%s3161_s1 + $0x3e8] sm:$0xff] }
  0x5f   :  { %v291_v26 = vld [vmem:[%s3161_s1 + $0x7c8] sm:$0xff]  ;;  %1715 = vmatpush1.bf16.msra.mxu0 %v2025_v20  ;;  %v2138_v32 = vcombine.high %v163_v24, %v167_v25  ;;  %v2137_v5 = vcombine.low %v163_v24, %v167_v25 }
  0x60   :  { %v295_v27 = vld [vmem:[%s3161_s1 + $0x7e8] sm:$0xff]  ;;  %1716 = vmatprep.subr.bf16.mxu0 %v2018_v22 }
  0x61   :  { %1756 = vmatpush1.bf16.msra.mxu1 %v2153_v21  ;;  %v2266_v33 = vcombine.high %v291_v26, %v295_v27  ;;  %v155_v63 = vld [vmem:[%s3161_s1 + $0x388] sm:$0xff]  ;;  %v2265_v37 = vcombine.low %v291_v26, %v295_v27 }
  0x62   :  { %1757 = vmatprep.subr.bf16.mxu1 %v2146_v23  ;;  %v159_v34 = vld [vmem:[%s3161_s1 + $0x3a8] sm:$0xff] }
  0x63   :  { %v283_v35 = vld [vmem:[%s3161_s1 + $0x788] sm:$0xff]  ;;  %1717 = vmatpush1.bf16.msra.mxu0 %v2017_v29  ;;  %v2130_v38 = vcombine.high %v155_v63, %v159_v34  ;;  %v2129_v45 = vcombine.low %v155_v63, %v159_v34  ;;  %v228_v63 = vld [vmem:[%s3161_s1 + $0x5d0] sm:$0xff] }
  0x64   :  { %v287_v36 = vld [vmem:[%s3161_s1 + $0x7a8] sm:$0xff]  ;;  %1718 = vmatprep.subr.bf16.mxu0 %v2138_v32  ;;  %v100_v32 = vld [vmem:[%s3161_s1 + $0x1d0] sm:$0xff] }
  0x65   :  { %1758 = vmatpush1.bf16.msra.mxu1 %v2145_v30  ;;  %v2258_v39 = vcombine.high %v283_v35, %v287_v36  ;;  %v147_v40 = vld [vmem:[%s3161_s1 + $0x348] sm:$0xff]  ;;  %v2257_v46 = vcombine.low %v283_v35, %v287_v36  ;;  %v232_v34 = vld [vmem:[%s3161_s1 + $0x5f0] sm:$0xff] }
  0x66   :  { %1759 = vmatprep.subr.bf16.mxu1 %v2266_v33  ;;  %v151_v41 = vld [vmem:[%s3161_s1 + $0x368] sm:$0xff]  ;;  %v104_v33 = vld [vmem:[%s3161_s1 + $0x1f0] sm:$0xff] }
  0x67   :  { %v275_v42 = vld [vmem:[%s3161_s1 + $0x748] sm:$0xff]  ;;  %1719 = vmatpush2.bf16.msra.mxu0 %v2137_v5  ;;  %v2122_v47 = vcombine.high %v147_v40, %v151_v41  ;;  %v2121_v54 = vcombine.low %v147_v40, %v151_v41  ;;  %v2076_v5 = vcombine.high %v100_v32, %v104_v33  ;;  %v220_v40 = vld [vmem:[%s3161_s1 + $0x590] sm:$0xff] }
  0x68   :  { %v279_v43 = vld [vmem:[%s3161_s1 + $0x768] sm:$0xff]  ;;  %1720 = vmatprep.subr.bf16.mxu0 %v2130_v38  ;;  %v92_v38 = vld [vmem:[%s3161_s1 + $0x190] sm:$0xff] }
  0x69   :  { %1760 = vmatpush2.bf16.msra.mxu1 %v2265_v37  ;;  %v2250_v48 = vcombine.high %v275_v42, %v279_v43  ;;  %v139_v49 = vld [vmem:[%s3161_s1 + $0x308] sm:$0xff]  ;;  %v2249_v55 = vcombine.low %v275_v42, %v279_v43  ;;  %v2204_v37 = vcombine.high %v228_v63, %v232_v34  ;;  %v224_v41 = vld [vmem:[%s3161_s1 + $0x5b0] sm:$0xff]  ;;  %v2075_v42 = vcombine.low %v100_v32, %v104_v33 }
  0x6a   :  { %1761 = vmatprep.subr.bf16.mxu1 %v2258_v39  ;;  %v143_v50 = vld [vmem:[%s3161_s1 + $0x328] sm:$0xff]  ;;  %v96_v39 = vld [vmem:[%s3161_s1 + $0x1b0] sm:$0xff]  ;;  %v2203_v43 = vcombine.low %v228_v63, %v232_v34 }
  0x6b   :  { %v267_v51 = vld [vmem:[%s3161_s1 + $0x708] sm:$0xff]  ;;  %1721 = vmatpush2.bf16.msra.mxu0 %v2129_v45  ;;  %v2114_v56 = vcombine.high %v139_v49, %v143_v50  ;;  %v2113_v62 = vcombine.low %v139_v49, %v143_v50  ;;  %v2068_v45 = vcombine.high %v92_v38, %v96_v39  ;;  %v212_v49 = vld [vmem:[%s3161_s1 + $0x550] sm:$0xff] }
  0x6c   :  { %v271_v52 = vld [vmem:[%s3161_s1 + $0x728] sm:$0xff]  ;;  %1722 = vmatprep.subr.bf16.mxu0 %v2122_v47  ;;  %v84_v47 = vld [vmem:[%s3161_s1 + $0x150] sm:$0xff] }
  0x6d   :  { %1762 = vmatpush2.bf16.msra.mxu1 %v2257_v46  ;;  %v2242_v57 = vcombine.high %v267_v51, %v271_v52  ;;  %v131_v58 = vld [vmem:[%s3161_s1 + $0x2c8] sm:$0xff]  ;;  %v2241_v0 = vcombine.low %v267_v51, %v271_v52  ;;  %v2196_v46 = vcombine.high %v220_v40, %v224_v41  ;;  %v216_v50 = vld [vmem:[%s3161_s1 + $0x570] sm:$0xff]  ;;  %v2067_v51 = vcombine.low %v92_v38, %v96_v39 }
  0x6e   :  { %1763 = vmatprep.subr.bf16.mxu1 %v2250_v48  ;;  %v135_v59 = vld [vmem:[%s3161_s1 + $0x2e8] sm:$0xff]  ;;  %v88_v48 = vld [vmem:[%s3161_s1 + $0x170] sm:$0xff]  ;;  %v2195_v52 = vcombine.low %v220_v40, %v224_v41 }
  0x6f   :  { %v259_v60 = vld [vmem:[%s3161_s1 + $0x6c8] sm:$0xff]  ;;  %1723 = vmatpush2.bf16.msra.mxu0 %v2121_v54  ;;  %v2106_v1 = vcombine.high %v131_v58, %v135_v59  ;;  %v2105_v8 = vcombine.low %v131_v58, %v135_v59  ;;  %v2060_v54 = vcombine.high %v84_v47, %v88_v48  ;;  %v204_v58 = vld [vmem:[%s3161_s1 + $0x510] sm:$0xff] }
  0x70   :  { %v263_v61 = vld [vmem:[%s3161_s1 + $0x6e8] sm:$0xff]  ;;  %1724 = vmatprep.subr.bf16.mxu0 %v2114_v56  ;;  %v76_v56 = vld [vmem:[%s3161_s1 + $0x110] sm:$0xff] }
  0x71   :  { %1764 = vmatpush2.bf16.msra.mxu1 %v2249_v55  ;;  %v2234_v2 = vcombine.high %v259_v60, %v263_v61  ;;  %v123_v3 = vld [vmem:[%s3161_s1 + $0x288] sm:$0xff]  ;;  %v2233_v9 = vcombine.low %v259_v60, %v263_v61  ;;  %v2188_v55 = vcombine.high %v212_v49, %v216_v50  ;;  %v208_v59 = vld [vmem:[%s3161_s1 + $0x530] sm:$0xff]  ;;  %v2059_v60 = vcombine.low %v84_v47, %v88_v48 }
  0x72   :  { %1765 = vmatprep.subr.bf16.mxu1 %v2242_v57  ;;  %v127_v4 = vld [vmem:[%s3161_s1 + $0x2a8] sm:$0xff]  ;;  %v80_v57 = vld [vmem:[%s3161_s1 + $0x130] sm:$0xff]  ;;  %v2187_v61 = vcombine.low %v212_v49, %v216_v50 }
  0x73   :  { %v251_v6 = vld [vmem:[%s3161_s1 + $0x688] sm:$0xff]  ;;  %1725 = vmatpush2.bf16.msra.mxu0 %v2113_v62  ;;  %v2098_v10 = vcombine.high %v123_v3, %v127_v4  ;;  %v2097_v18 = vcombine.low %v123_v3, %v127_v4  ;;  %v2052_v62 = vcombine.high %v76_v56, %v80_v57  ;;  %v196_v3 = vld [vmem:[%s3161_s1 + $0x4d0] sm:$0xff] }
  0x74   :  { %v255_v7 = vld [vmem:[%s3161_s1 + $0x6a8] sm:$0xff]  ;;  %1726 = vmatprep.subr.bf16.mxu0 %v2106_v1  ;;  %v68_v1 = vld [vmem:[%s3161_s1 + $0xd0] sm:$0xff] }
  0x75   :  { %1766 = vmatpush2.bf16.msra.mxu1 %v2241_v0  ;;  %v2226_v12 = vcombine.high %v251_v6, %v255_v7  ;;  %v115_v13 = vld [vmem:[%s3161_s1 + $0x248] sm:$0xff]  ;;  %v2225_v19 = vcombine.low %v251_v6, %v255_v7  ;;  %v2180_v0 = vcombine.high %v204_v58, %v208_v59  ;;  %v200_v4 = vld [vmem:[%s3161_s1 + $0x4f0] sm:$0xff]  ;;  %v2051_v6 = vcombine.low %v76_v56, %v80_v57 }
  0x76   :  { %1767 = vmatprep.subr.bf16.mxu1 %v2234_v2  ;;  %v119_v14 = vld [vmem:[%s3161_s1 + $0x268] sm:$0xff]  ;;  %v72_v2 = vld [vmem:[%s3161_s1 + $0xf0] sm:$0xff]  ;;  %v2179_v7 = vcombine.low %v204_v58, %v208_v59 }
  0x77   :  { %v243_v15 = vld [vmem:[%s3161_s1 + $0x648] sm:$0xff]  ;;  %1727 = vmatpush2.bf16.msra.mxu0 %v2105_v8  ;;  %v2090_v20 = vcombine.high %v115_v13, %v119_v14  ;;  %v2089_v26 = vcombine.low %v115_v13, %v119_v14  ;;  %v2044_v8 = vcombine.high %v68_v1, %v72_v2  ;;  %v188_v13 = vld [vmem:[%s3161_s1 + $0x490] sm:$0xff] }
  0x78   :  { %v247_v17 = vld [vmem:[%s3161_s1 + $0x668] sm:$0xff]  ;;  %1728 = vmatprep.subr.bf16.mxu0 %v2098_v10  ;;  %v60_v10 = vld [vmem:[%s3161_s1 + $0x90] sm:$0xff] }
  0x79   :  { %1768 = vmatpush2.bf16.msra.mxu1 %v2233_v9  ;;  %v2218_v21 = vcombine.high %v243_v15, %v247_v17  ;;  %v107_v22 = vld [vmem:[%s3161_s1 + $0x208] sm:$0xff]  ;;  %v2217_v27 = vcombine.low %v243_v15, %v247_v17  ;;  %v2172_v9 = vcombine.high %v196_v3, %v200_v4  ;;  %v192_v14 = vld [vmem:[%s3161_s1 + $0x4b0] sm:$0xff]  ;;  %v2043_v15 = vcombine.low %v68_v1, %v72_v2 }
  0x7a   :  { %1769 = vmatprep.subr.bf16.mxu1 %v2226_v12  ;;  %v111_v23 = vld [vmem:[%s3161_s1 + $0x228] sm:$0xff]  ;;  %v64_v12 = vld [vmem:[%s3161_s1 + $0xb0] sm:$0xff]  ;;  %v2171_v17 = vcombine.low %v196_v3, %v200_v4 }
  0x7b   :  { %v235_v24 = vld [vmem:[%s3161_s1 + $0x608] sm:$0xff]  ;;  %1729 = vmatpush2.bf16.msra.mxu0 %v2097_v18  ;;  %v2082_v29 = vcombine.high %v107_v22, %v111_v23  ;;  %v2081_v35 = vcombine.low %v107_v22, %v111_v23  ;;  %v2036_v18 = vcombine.high %v60_v10, %v64_v12  ;;  %v180_v22 = vld [vmem:[%s3161_s1 + $0x450] sm:$0xff] }
  0x7c   :  { %v239_v25 = vld [vmem:[%s3161_s1 + $0x628] sm:$0xff]  ;;  %1730 = vmatprep.subr.bf16.mxu0 %v2090_v20  ;;  %v52_v20 = vld [vmem:[%s3161_s1 + $0x50] sm:$0xff] }
  0x7d   :  { %1770 = vmatpush2.bf16.msra.mxu1 %v2225_v19  ;;  %v2210_v30 = vcombine.high %v235_v24, %v239_v25  ;;  %v2209_v36 = vcombine.low %v235_v24, %v239_v25  ;;  %v2164_v19 = vcombine.high %v188_v13, %v192_v14  ;;  %v184_v23 = vld [vmem:[%s3161_s1 + $0x470] sm:$0xff]  ;;  %v2035_v24 = vcombine.low %v60_v10, %v64_v12 }
  0x7e   :  { %1771 = vmatprep.subr.bf16.mxu1 %v2218_v21  ;;  %v56_v21 = vld [vmem:[%s3161_s1 + $0x70] sm:$0xff]  ;;  %v2163_v25 = vcombine.low %v188_v13, %v192_v14  ;;  %v2155_v34 = vcombine.low %v180_v22, %v184_v23 }
  0x7f   :  { %1731 = vmatpush2.bf16.msra.mxu0 %v2089_v26  ;;  %v2028_v26 = vcombine.high %v52_v20, %v56_v21  ;;  %v172_v32 = vld [vmem:[%s3161_s1 + $0x410] sm:$0xff]  ;;  %v2027_v63 = vcombine.low %v52_v20, %v56_v21 }
  0x80   :  { %1732 = vmatprep.subr.bf16.mxu0 %v2082_v29  ;;  %v44_v29 = vld [vmem:[%s3161_s1 + $0x10] sm:$0xff] }
  0x81   :  { %1772 = vmatpush2.bf16.msra.mxu1 %v2217_v27  ;;  %v2156_v27 = vcombine.high %v180_v22, %v184_v23  ;;  %v176_v33 = vld [vmem:[%s3161_s1 + $0x430] sm:$0xff] }
  0x82   :  { %1773 = vmatprep.subr.bf16.mxu1 %v2210_v30  ;;  %v48_v30 = vld [vmem:[%s3161_s1 + $0x30] sm:$0xff]  ;;  %v2147_v41 = vcombine.low %v172_v32, %v176_v33 }
  0x83   :  { %1733 = vmatpush2.bf16.msra.mxu0 %v2081_v35  ;;  %v2020_v35 = vcombine.high %v44_v29, %v48_v30  ;;  %v292_v38 = vld [vmem:[%s3161_s1 + $0x7d0] sm:$0xff]  ;;  %v2019_v40 = vcombine.low %v44_v29, %v48_v30 }
  0x84   :  { %1784 = vmatprep.subr.bf16.mxu0 %v2076_v5  ;;  %v164_v5 = vld [vmem:[%s3161_s1 + $0x3d0] sm:$0xff] }
  0x85   :  { %1774 = vmatpush2.bf16.msra.mxu1 %v2209_v36  ;;  %v2148_v36 = vcombine.high %v172_v32, %v176_v33  ;;  %v296_v39 = vld [vmem:[%s3161_s1 + $0x7f0] sm:$0xff] }
  0x86   :  { %1825 = vmatprep.subr.bf16.mxu1 %v2204_v37  ;;  %1735 = vmatmul.mubr.bf16.vlgmr.msra.gmra.mxu0 %v2554_v28  ;;  %v168_v37 = vld [vmem:[%s3161_s1 + $0x3f0] sm:$0xff]  ;;  %v2267_v50 = vcombine.low %v292_v38, %v296_v39 }
  0x87   :  { %1785 = vmatpush1.bf16.msra.mxu0 %v2075_v42  ;;  %1816 = vmatprep.mubr.bf16.mxu0 %v2436_v11  ;;  %v2140_v42 = vcombine.high %v164_v5, %v168_v37  ;;  %v284_v47 = vld [vmem:[%s3161_s1 + $0x790] sm:$0xff]  ;;  %v2139_v49 = vcombine.low %v164_v5, %v168_v37 }
  0x88   :  { %1776 = vmatmul.mubr.bf16.vlgmr.msra.gmra.mxu1 %v2564_v31  ;;  %1786 = vmatprep.subr.bf16.mxu0 %v2068_v45  ;;  %v156_v45 = vld [vmem:[%s3161_s1 + $0x390] sm:$0xff] }
  0x89   :  { %1826 = vmatpush1.bf16.msra.mxu1 %v2203_v43  ;;  %1857 = vmatprep.mubr.bf16.mxu1 %v2447_v16  ;;  %v2268_v43 = vcombine.high %v292_v38, %v296_v39  ;;  %v288_v48 = vld [vmem:[%s3161_s1 + $0x7b0] sm:$0xff] }
  0x8a   :  { %1827 = vmatprep.subr.bf16.mxu1 %v2196_v46  ;;  %v160_v46 = vld [vmem:[%s3161_s1 + $0x3b0] sm:$0xff]  ;;  %v2259_v59 = vcombine.low %v284_v47, %v288_v48 }
  0x8b   :  { %1787 = vmatpush1.bf16.msra.mxu0 %v2067_v51  ;;  %v2132_v51 = vcombine.high %v156_v45, %v160_v46  ;;  %v276_v56 = vld [vmem:[%s3161_s1 + $0x750] sm:$0xff]  ;;  %v2131_v58 = vcombine.low %v156_v45, %v160_v46  ;;  %v229_v45 = vld [vmem:[%s3161_s1 + $0x5d8] sm:$0xff] }
  0x8c   :  { %1788 = vmatprep.subr.bf16.mxu0 %v2060_v54  ;;  %v148_v54 = vld [vmem:[%s3161_s1 + $0x350] sm:$0xff]  ;;  %v233_v46 = vld [vmem:[%s3161_s1 + $0x5f8] sm:$0xff] }
  0x8d   :  { %1828 = vmatpush1.bf16.msra.mxu1 %v2195_v52  ;;  %v2260_v52 = vcombine.high %v284_v47, %v288_v48  ;;  %v280_v57 = vld [vmem:[%s3161_s1 + $0x770] sm:$0xff] }
  0x8e   :  { %1829 = vmatprep.subr.bf16.mxu1 %v2188_v55  ;;  %v152_v55 = vld [vmem:[%s3161_s1 + $0x370] sm:$0xff]  ;;  %v2251_v4 = vcombine.low %v276_v56, %v280_v57 }
  0x8f   :  { %1789 = vmatpush1.bf16.msra.mxu0 %v2059_v60  ;;  %v2124_v60 = vcombine.high %v148_v54, %v152_v55  ;;  %v268_v1 = vld [vmem:[%s3161_s1 + $0x710] sm:$0xff]  ;;  %v2123_v3 = vcombine.low %v148_v54, %v152_v55  ;;  %v221_v54 = vld [vmem:[%s3161_s1 + $0x598] sm:$0xff] }
  0x90   :  { %1790 = vmatprep.subr.bf16.mxu0 %v2052_v62  ;;  %v140_v62 = vld [vmem:[%s3161_s1 + $0x310] sm:$0xff]  ;;  %v225_v55 = vld [vmem:[%s3161_s1 + $0x5b8] sm:$0xff] }
  0x91   :  { %1830 = vmatpush1.bf16.msra.mxu1 %v2187_v61  ;;  %v2252_v61 = vcombine.high %v276_v56, %v280_v57  ;;  %v272_v2 = vld [vmem:[%s3161_s1 + $0x730] sm:$0xff]  ;;  %v2205_v57 = vcombine.low %v229_v45, %v233_v46 }
  0x92   :  { %1831 = vmatprep.subr.bf16.mxu1 %v2180_v0  ;;  %v144_v0 = vld [vmem:[%s3161_s1 + $0x330] sm:$0xff]  ;;  %v2243_v14 = vcombine.low %v268_v1, %v272_v2 }
  0x93   :  { %1791 = vmatpush1.bf16.msra.mxu0 %v2051_v6  ;;  %v2116_v6 = vcombine.high %v140_v62, %v144_v0  ;;  %v260_v10 = vld [vmem:[%s3161_s1 + $0x6d0] sm:$0xff]  ;;  %v2115_v13 = vcombine.low %v140_v62, %v144_v0  ;;  %v213_v62 = vld [vmem:[%s3161_s1 + $0x558] sm:$0xff] }
  0x94   :  { %1792 = vmatprep.subr.bf16.mxu0 %v2044_v8  ;;  %v132_v8 = vld [vmem:[%s3161_s1 + $0x2d0] sm:$0xff]  ;;  %v217_v0 = vld [vmem:[%s3161_s1 + $0x578] sm:$0xff] }
  0x95   :  { %1832 = vmatpush1.bf16.msra.mxu1 %v2179_v7  ;;  %v2244_v7 = vcombine.high %v268_v1, %v272_v2  ;;  %v264_v12 = vld [vmem:[%s3161_s1 + $0x6f0] sm:$0xff]  ;;  %v2197_v2 = vcombine.low %v221_v54, %v225_v55 }
  0x96   :  { %1833 = vmatprep.subr.bf16.mxu1 %v2172_v9  ;;  %v136_v9 = vld [vmem:[%s3161_s1 + $0x2f0] sm:$0xff]  ;;  %v2235_v23 = vcombine.low %v260_v10, %v264_v12 }
  0x97   :  { %1793 = vmatpush1.bf16.msra.mxu0 %v2043_v15  ;;  %v2108_v15 = vcombine.high %v132_v8, %v136_v9  ;;  %v252_v20 = vld [vmem:[%s3161_s1 + $0x690] sm:$0xff]  ;;  %v2107_v22 = vcombine.low %v132_v8, %v136_v9  ;;  %v205_v8 = vld [vmem:[%s3161_s1 + $0x518] sm:$0xff] }
  0x98   :  { %1794 = vmatprep.subr.bf16.mxu0 %v2036_v18  ;;  %v124_v18 = vld [vmem:[%s3161_s1 + $0x290] sm:$0xff]  ;;  %v209_v9 = vld [vmem:[%s3161_s1 + $0x538] sm:$0xff] }
  0x99   :  { %1834 = vmatpush1.bf16.msra.mxu1 %v2171_v17  ;;  %v2236_v17 = vcombine.high %v260_v10, %v264_v12  ;;  %v256_v21 = vld [vmem:[%s3161_s1 + $0x6b0] sm:$0xff]  ;;  %v2189_v12 = vcombine.low %v213_v62, %v217_v0 }
  0x9a   :  { %1835 = vmatprep.subr.bf16.mxu1 %v2164_v19  ;;  %v128_v19 = vld [vmem:[%s3161_s1 + $0x2b0] sm:$0xff]  ;;  %v2227_v33 = vcombine.low %v252_v20, %v256_v21 }
  0x9b   :  { %1795 = vmatpush1.bf16.msra.mxu0 %v2035_v24  ;;  %v2100_v24 = vcombine.high %v124_v18, %v128_v19  ;;  %v244_v29 = vld [vmem:[%s3161_s1 + $0x650] sm:$0xff]  ;;  %v2099_v32 = vcombine.low %v124_v18, %v128_v19  ;;  %v2181_v19 = vcombine.low %v205_v8, %v209_v9 }
  0x9c   :  { %1796 = vmatprep.subr.bf16.mxu0 %v2028_v26  ;;  %v116_v26 = vld [vmem:[%s3161_s1 + $0x250] sm:$0xff] }
  0x9d   :  { %1836 = vmatpush1.bf16.msra.mxu1 %v2163_v25  ;;  %v2228_v25 = vcombine.high %v252_v20, %v256_v21  ;;  %v248_v30 = vld [vmem:[%s3161_s1 + $0x670] sm:$0xff] }
  0x9e   :  { %1837 = vmatprep.subr.bf16.mxu1 %v2156_v27  ;;  %v120_v27 = vld [vmem:[%s3161_s1 + $0x270] sm:$0xff]  ;;  %v2219_v39 = vcombine.low %v244_v29, %v248_v30 }
  0x9f   :  { %1797 = vmatpush1.bf16.msra.mxu0 %v2027_v63  ;;  %v2092_v63 = vcombine.high %v116_v26, %v120_v27  ;;  %v236_v5 = vld [vmem:[%s3161_s1 + $0x610] sm:$0xff]  ;;  %v2091_v38 = vcombine.low %v116_v26, %v120_v27 }
  0xa0   :  { %1798 = vmatprep.subr.bf16.mxu0 %v2020_v35  ;;  %v108_v35 = vld [vmem:[%s3161_s1 + $0x210] sm:$0xff] }
  0xa1   :  { %1838 = vmatpush1.bf16.msra.mxu1 %v2155_v34  ;;  %v2220_v34 = vcombine.high %v244_v29, %v248_v30  ;;  %v240_v37 = vld [vmem:[%s3161_s1 + $0x630] sm:$0xff] }
  0xa2   :  { %1839 = vmatprep.subr.bf16.mxu1 %v2148_v36  ;;  %v112_v36 = vld [vmem:[%s3161_s1 + $0x230] sm:$0xff]  ;;  %v2211_v48 = vcombine.low %v236_v5, %v240_v37 }
  0xa3   :  { %1799 = vmatpush1.bf16.msra.mxu0 %v2019_v40  ;;  %v2084_v40 = vcombine.high %v108_v35, %v112_v36  ;;  %v2083_v47 = vcombine.low %v108_v35, %v112_v36 }
  0xa4   :  { %1800 = vmatprep.subr.bf16.mxu0 %v2140_v42  ;;  %v101_v42 = vld [vmem:[%s3161_s1 + $0x1d8] sm:$0xff] }
  0xa5   :  { %1840 = vmatpush1.bf16.msra.mxu1 %v2147_v41  ;;  %v2212_v41 = vcombine.high %v236_v5, %v240_v37 }
  0xa6   :  { %1841 = vmatprep.subr.bf16.mxu1 %v2268_v43  ;;  %v105_v43 = vld [vmem:[%s3161_s1 + $0x1f8] sm:$0xff] }
  0xa7   :  { %1801 = vmatpush2.bf16.msra.mxu0 %v2139_v49  ;;  %v2078_v49 = vcombine.high %v101_v42, %v105_v43  ;;  %v2077_v56 = vcombine.low %v101_v42, %v105_v43 }
  0xa8   :  { %1802 = vmatprep.subr.bf16.mxu0 %v2132_v51  ;;  %v93_v51 = vld [vmem:[%s3161_s1 + $0x198] sm:$0xff] }
  0xa9   :  { %1842 = vmatpush2.bf16.msra.mxu1 %v2267_v50  ;;  %v2206_v50 = vcombine.high %v229_v45, %v233_v46 }
  0xaa   :  { %1843 = vmatprep.subr.bf16.mxu1 %v2260_v52  ;;  %v97_v52 = vld [vmem:[%s3161_s1 + $0x1b8] sm:$0xff] }
  0xab   :  { %1803 = vmatpush2.bf16.msra.mxu0 %v2131_v58  ;;  %v2070_v58 = vcombine.high %v93_v51, %v97_v52  ;;  %v2069_v1 = vcombine.low %v93_v51, %v97_v52 }
  0xac   :  { %1804 = vmatprep.subr.bf16.mxu0 %v2124_v60  ;;  %v85_v60 = vld [vmem:[%s3161_s1 + $0x158] sm:$0xff] }
  0xad   :  { %1844 = vmatpush2.bf16.msra.mxu1 %v2259_v59  ;;  %v2198_v59 = vcombine.high %v221_v54, %v225_v55 }
  0xae   :  { %1845 = vmatprep.subr.bf16.mxu1 %v2252_v61  ;;  %v89_v61 = vld [vmem:[%s3161_s1 + $0x178] sm:$0xff] }
  0xaf   :  { %1805 = vmatpush2.bf16.msra.mxu0 %v2123_v3  ;;  %v2062_v3 = vcombine.high %v85_v60, %v89_v61  ;;  %v2061_v10 = vcombine.low %v85_v60, %v89_v61 }
  0xb0   :  { %1806 = vmatprep.subr.bf16.mxu0 %v2116_v6  ;;  %v77_v6 = vld [vmem:[%s3161_s1 + $0x118] sm:$0xff] }
  0xb1   :  { %1846 = vmatpush2.bf16.msra.mxu1 %v2251_v4  ;;  %v2190_v4 = vcombine.high %v213_v62, %v217_v0 }
  0xb2   :  { %1847 = vmatprep.subr.bf16.mxu1 %v2244_v7  ;;  %v81_v7 = vld [vmem:[%s3161_s1 + $0x138] sm:$0xff] }
  0xb3   :  { %1807 = vmatpush2.bf16.msra.mxu0 %v2115_v13  ;;  %v2054_v13 = vcombine.high %v77_v6, %v81_v7  ;;  %v2053_v18 = vcombine.low %v77_v6, %v81_v7 }
  0xb4   :  { %1808 = vmatprep.subr.bf16.mxu0 %v2108_v15  ;;  %v73_v15 = vld [vmem:[%s3161_s1 + $0xf8] sm:$0xff] }
  0xb5   :  { %1848 = vmatpush2.bf16.msra.mxu1 %v2243_v14  ;;  %v2182_v14 = vcombine.high %v205_v8, %v209_v9 }
  0xb6   :  { %1849 = vmatprep.subr.bf16.mxu1 %v2236_v17  ;;  %v201_v17 = vld [vmem:[%s3161_s1 + $0x4f8] sm:$0xff] }
  0xb7   :  { %1809 = vmatpush2.bf16.msra.mxu0 %v2107_v22  ;;  %v61_v22 = vld [vmem:[%s3161_s1 + $0x98] sm:$0xff] }
  0xb8   :  { %1810 = vmatprep.subr.bf16.mxu0 %v2100_v24  ;;  %v189_v24 = vld [vmem:[%s3161_s1 + $0x498] sm:$0xff] }
  0xb9   :  { %1850 = vmatpush2.bf16.msra.mxu1 %v2235_v23  ;;  %v65_v23 = vld [vmem:[%s3161_s1 + $0xb8] sm:$0xff] }
  0xba   :  { %1851 = vmatprep.subr.bf16.mxu1 %v2228_v25  ;;  %v193_v25 = vld [vmem:[%s3161_s1 + $0x4b8] sm:$0xff]  ;;  %v2038_v29 = vcombine.high %v61_v22, %v65_v23  ;;  %v2037_v35 = vcombine.low %v61_v22, %v65_v23 }
  0xbb   :  { %1811 = vmatpush2.bf16.msra.mxu0 %v2099_v32  ;;  %v2166_v30 = vcombine.high %v189_v24, %v193_v25  ;;  %v53_v32 = vld [vmem:[%s3161_s1 + $0x58] sm:$0xff]  ;;  %v2165_v36 = vcombine.low %v189_v24, %v193_v25 }
  0xbc   :  { %1812 = vmatprep.subr.bf16.mxu0 %v2092_v63  ;;  %v181_v63 = vld [vmem:[%s3161_s1 + $0x458] sm:$0xff] }
  0xbd   :  { %1852 = vmatpush2.bf16.msra.mxu1 %v2227_v33  ;;  %v57_v33 = vld [vmem:[%s3161_s1 + $0x78] sm:$0xff] }
  0xbe   :  { %1853 = vmatprep.subr.bf16.mxu1 %v2220_v34  ;;  %v185_v34 = vld [vmem:[%s3161_s1 + $0x478] sm:$0xff]  ;;  %v2030_v5 = vcombine.high %v53_v32, %v57_v33  ;;  %v2029_v42 = vcombine.low %v53_v32, %v57_v33 }
  0xbf   :  { %1813 = vmatpush2.bf16.msra.mxu0 %v2091_v38  ;;  %v2158_v37 = vcombine.high %v181_v63, %v185_v34  ;;  %v45_v38 = vld [vmem:[%s3161_s1 + $0x18] sm:$0xff]  ;;  %v2157_v43 = vcombine.low %v181_v63, %v185_v34 }
  0xc0   :  { %1814 = vmatprep.subr.bf16.mxu0 %v2084_v40  ;;  %v173_v40 = vld [vmem:[%s3161_s1 + $0x418] sm:$0xff] }
  0xc1   :  { %1854 = vmatpush2.bf16.msra.mxu1 %v2219_v39  ;;  %v49_v39 = vld [vmem:[%s3161_s1 + $0x38] sm:$0xff] }
  0xc2   :  { %1855 = vmatprep.subr.bf16.mxu1 %v2212_v41  ;;  %v177_v41 = vld [vmem:[%s3161_s1 + $0x438] sm:$0xff]  ;;  %v2022_v45 = vcombine.high %v45_v38, %v49_v39  ;;  %v2021_v51 = vcombine.low %v45_v38, %v49_v39 }
  0xc3   :  { %1815 = vmatpush2.bf16.msra.mxu0 %v2083_v47  ;;  %v2150_v46 = vcombine.high %v173_v40, %v177_v41  ;;  %v165_v47 = vld [vmem:[%s3161_s1 + $0x3d8] sm:$0xff]  ;;  %v2149_v52 = vcombine.low %v173_v40, %v177_v41 }
  0xc4   :  { %1866 = vmatprep.subr.bf16.mxu0 %v2078_v49  ;;  %v293_v49 = vld [vmem:[%s3161_s1 + $0x7d8] sm:$0xff] }
  0xc5   :  { %1856 = vmatpush2.bf16.msra.mxu1 %v2211_v48  ;;  %v169_v48 = vld [vmem:[%s3161_s1 + $0x3f8] sm:$0xff] }
  0xc6   :  { %1907 = vmatprep.subr.bf16.mxu1 %v2206_v50  ;;  %1817 = vmatmul.mubr.bf16.vlgmr.msra.gmra.mxu0 %v2554_v28  ;;  %v297_v50 = vld [vmem:[%s3161_s1 + $0x7f8] sm:$0xff]  ;;  %v2142_v54 = vcombine.high %v165_v47, %v169_v48  ;;  %v2141_v60 = vcombine.low %v165_v47, %v169_v48 }
  0xc7   :  { %1867 = vmatpush1.bf16.msra.mxu0 %v2077_v56  ;;  %1898 = vmatprep.mubr.bf16.mxu0 %v2436_v11  ;;  %v69_v11 = vld [vmem:[%s3161_s1 + $0xd8] sm:$0xff]  ;;  %v2270_v55 = vcombine.high %v293_v49, %v297_v50  ;;  %v2269_v61 = vcombine.low %v293_v49, %v297_v50 }
  0xc8   :  { %1858 = vmatmul.mubr.bf16.vlgmr.msra.gmra.mxu1 %v2564_v31  ;;  %1868 = vmatprep.subr.bf16.mxu0 %v2070_v58  ;;  %v2046_v20 = vcombine.high %v69_v11, %v73_v15  ;;  %v2045_v26 = vcombine.low %v69_v11, %v73_v15  ;;  %v157_v56 = vld [vmem:[%s3161_s1 + $0x398] sm:$0xff] }
  0xc9   :  { %1908 = vmatpush1.bf16.msra.mxu1 %v2205_v57  ;;  %1939 = vmatprep.mubr.bf16.mxu1 %v2447_v16  ;;  %v197_v16 = vld [vmem:[%s3161_s1 + $0x4d8] sm:$0xff] }
  0xca   :  { %1909 = vmatprep.subr.bf16.mxu1 %v2198_v59  ;;  %v2174_v21 = vcombine.high %v197_v16, %v201_v17  ;;  %v2173_v27 = vcombine.low %v197_v16, %v201_v17  ;;  %v161_v57 = vld [vmem:[%s3161_s1 + $0x3b8] sm:$0xff] }
  0xcb   :  { %1869 = vmatpush1.bf16.msra.mxu0 %v2069_v1  ;;  %v285_v58 = vld [vmem:[%s3161_s1 + $0x798] sm:$0xff]  ;;  %v2134_v62 = vcombine.high %v157_v56, %v161_v57  ;;  %v2133_v6 = vcombine.low %v157_v56, %v161_v57  ;;  %v306_v56 = vsub.s32 1, %v2384_v44 }
  0xcc   :  { %1870 = vmatprep.subr.bf16.mxu0 %v2062_v3  ;;  %v289_v59 = vld [vmem:[%s3161_s1 + $0x7b8] sm:$0xff] }
  0xcd   :  { %1910 = vmatpush1.bf16.msra.mxu1 %v2197_v2  ;;  %v2262_v0 = vcombine.high %v285_v58, %v289_v59  ;;  %v149_v1 = vld [vmem:[%s3161_s1 + $0x358] sm:$0xff]  ;;  %v2261_v7 = vcombine.low %v285_v58, %v289_v59 }
  0xce   :  { %1911 = vmatprep.subr.bf16.mxu1 %v2190_v4  ;;  %v153_v2 = vld [vmem:[%s3161_s1 + $0x378] sm:$0xff] }
  0xcf   :  { %1871 = vmatpush1.bf16.msra.mxu0 %v2061_v10  ;;  %v277_v3 = vld [vmem:[%s3161_s1 + $0x758] sm:$0xff]  ;;  %v2126_v8 = vcombine.high %v149_v1, %v153_v2  ;;  %v2125_v11 = vcombine.low %v149_v1, %v153_v2 }
  0xd0   :  { %1872 = vmatprep.subr.bf16.mxu0 %v2054_v13  ;;  %v281_v4 = vld [vmem:[%s3161_s1 + $0x778] sm:$0xff] }
  0xd1   :  { %1912 = vmatpush1.bf16.msra.mxu1 %v2189_v12  ;;  %v2254_v9 = vcombine.high %v277_v3, %v281_v4  ;;  %v141_v10 = vld [vmem:[%s3161_s1 + $0x318] sm:$0xff]  ;;  %v2253_v15 = vcombine.low %v277_v3, %v281_v4 }
  0xd2   :  { %1913 = vmatprep.subr.bf16.mxu1 %v2182_v14  ;;  %v145_v12 = vld [vmem:[%s3161_s1 + $0x338] sm:$0xff] }
  0xd3   :  { %1873 = vmatpush1.bf16.msra.mxu0 %v2053_v18  ;;  %v269_v13 = vld [vmem:[%s3161_s1 + $0x718] sm:$0xff]  ;;  %v2118_v16 = vcombine.high %v141_v10, %v145_v12  ;;  %v2117_v22 = vcombine.low %v141_v10, %v145_v12  ;;  %v310_v10 = vsub.s32 2, %v2384_v44  ;;  %v314_v12 = vsub.s32 3, %v2384_v44 }
  0xd4   :  { %1874 = vmatprep.subr.bf16.mxu0 %v2046_v20  ;;  %v273_v14 = vld [vmem:[%s3161_s1 + $0x738] sm:$0xff] }
  0xd5   :  { %1914 = vmatpush1.bf16.msra.mxu1 %v2181_v19  ;;  %v2246_v17 = vcombine.high %v269_v13, %v273_v14  ;;  %v133_v18 = vld [vmem:[%s3161_s1 + $0x2d8] sm:$0xff]  ;;  %v2245_v23 = vcombine.low %v269_v13, %v273_v14 }
  0xd6   :  { %1915 = vmatprep.subr.bf16.mxu1 %v2174_v21  ;;  %v137_v19 = vld [vmem:[%s3161_s1 + $0x2f8] sm:$0xff] }
  0xd7   :  { %1875 = vmatpush1.bf16.msra.mxu0 %v2045_v26  ;;  %v261_v20 = vld [vmem:[%s3161_s1 + $0x6d8] sm:$0xff]  ;;  %v2110_v24 = vcombine.high %v133_v18, %v137_v19  ;;  %v2109_v32 = vcombine.low %v133_v18, %v137_v19 }
  0xd8   :  { %1876 = vmatprep.subr.bf16.mxu0 %v2038_v29  ;;  %v265_v21 = vld [vmem:[%s3161_s1 + $0x6f8] sm:$0xff] }
  0xd9   :  { %1916 = vmatpush1.bf16.msra.mxu1 %v2173_v27  ;;  %v2238_v25 = vcombine.high %v261_v20, %v265_v21  ;;  %v125_v26 = vld [vmem:[%s3161_s1 + $0x298] sm:$0xff]  ;;  %v2237_v33 = vcombine.low %v261_v20, %v265_v21 }
  0xda   :  { %1917 = vmatprep.subr.bf16.mxu1 %v2166_v30  ;;  %v129_v27 = vld [vmem:[%s3161_s1 + $0x2b8] sm:$0xff] }
  0xdb   :  { %1877 = vmatpush1.bf16.msra.mxu0 %v2037_v35  ;;  %v253_v29 = vld [vmem:[%s3161_s1 + $0x698] sm:$0xff]  ;;  %v2102_v63 = vcombine.high %v125_v26, %v129_v27  ;;  %v2101_v38 = vcombine.low %v125_v26, %v129_v27 }
  0xdc   :  { %1878 = vmatprep.subr.bf16.mxu0 %v2030_v5  ;;  %v257_v30 = vld [vmem:[%s3161_s1 + $0x6b8] sm:$0xff] }
  0xdd   :  { %1918 = vmatpush1.bf16.msra.mxu1 %v2165_v36  ;;  %v2230_v34 = vcombine.high %v253_v29, %v257_v30  ;;  %v117_v35 = vld [vmem:[%s3161_s1 + $0x258] sm:$0xff]  ;;  %v2229_v39 = vcombine.low %v253_v29, %v257_v30  ;;  %v318_v29 = vsub.s32 4, %v2384_v44  ;;  %v322_v30 = vsub.s32 5, %v2384_v44 }
  0xde   :  { %1919 = vmatprep.subr.bf16.mxu1 %v2158_v37  ;;  %v121_v36 = vld [vmem:[%s3161_s1 + $0x278] sm:$0xff] }
  0xdf   :  { %1879 = vmatpush1.bf16.msra.mxu0 %v2029_v42  ;;  %v245_v5 = vld [vmem:[%s3161_s1 + $0x658] sm:$0xff]  ;;  %v2094_v40 = vcombine.high %v117_v35, %v121_v36  ;;  %v2093_v47 = vcombine.low %v117_v35, %v121_v36 }
  0xe0   :  { %1880 = vmatprep.subr.bf16.mxu0 %v2022_v45  ;;  %v249_v37 = vld [vmem:[%s3161_s1 + $0x678] sm:$0xff] }
  0xe1   :  { %1920 = vmatpush1.bf16.msra.mxu1 %v2157_v43  ;;  %v2222_v41 = vcombine.high %v245_v5, %v249_v37  ;;  %v109_v42 = vld [vmem:[%s3161_s1 + $0x218] sm:$0xff]  ;;  %v2221_v48 = vcombine.low %v245_v5, %v249_v37 }
  0xe2   :  { %1921 = vmatprep.subr.bf16.mxu1 %v2150_v46  ;;  %v113_v43 = vld [vmem:[%s3161_s1 + $0x238] sm:$0xff] }
  0xe3   :  { %1881 = vmatpush1.bf16.msra.mxu0 %v2021_v51  ;;  %v237_v45 = vld [vmem:[%s3161_s1 + $0x618] sm:$0xff]  ;;  %v2086_v49 = vcombine.high %v109_v42, %v113_v43  ;;  %v2085_v51 = vcombine.low %v109_v42, %v113_v43 }
  0xe4   :  { %1882 = vmatprep.subr.bf16.mxu0 %v2142_v54  ;;  %v241_v46 = vld [vmem:[%s3161_s1 + $0x638] sm:$0xff]  ;;  %s2297_s1 = smov [#allocation2]  }
  0xe5   :  { %1922 = vmatpush1.bf16.msra.mxu1 %v2149_v52  ;;  %v2214_v50 = vcombine.high %v237_v45, %v241_v46  ;;  %v302_v52 = vsub.s32 0, %v2384_v44  ;;  %v2213_v54 = vcombine.low %v237_v45, %v241_v46  ;;  %v326_v46 = vsub.s32 6, %v2384_v44 }
  0xe6   :  { %1923 = vmatprep.subr.bf16.mxu1 %v2270_v55  ;;  %v3134_v55 = vld [vmem:[%s3162_s2] sm:$0xff]  ;;  %s2007_s2 = sshll.u32 %s2297_s1, 4  ;;  %s2008_s2 = int_to_ptr.vmem [resolvable:$true] %s2007_s2 }
  0xe7   :  { %1883 = vmatpush2.bf16.msra.mxu0 %v2141_v60  ;;  %v303_v57 = vrot.slane %v3134_v55, %v302_v52  ;;  %v307_v58 = vrot.slane %v3134_v55, %v306_v56  ;;  %v315_v13 = vrot.slane %v3134_v55, %v314_v12  ;;  %s2274_s25 = scalar_lea.vmem %s2008_s2, 256  ;;  %p2279_p1 = scmp.lt.s32.totalorder %s2008_s2, %s2008_s2 }
  0xe8   :  { %1884 = vmatprep.subr.bf16.mxu0 %v2134_v62  ;;  %p2275_p0 = scmp.ne.s32.totalorder %s2008_s2, %s2274_s25  ;;  %p2280_p2 = scmp.lt.s32.totalorder %s2274_s25, %s2274_s25 }
  0xe9   :  { %1924 = vmatpush2.bf16.msra.mxu1 %v2269_v61 }
  0xea   :  { %1925 = vmatprep.subr.bf16.mxu1 %v2262_v0  ;;  %p2281_p3 = por %p2280_p2, %p2279_p1 }
  0xeb   :  { %1885 = vmatpush2.bf16.msra.mxu0 %v2133_v6 }
  0xec   :  { %1886 = vmatprep.subr.bf16.mxu0 %v2126_v8  ;;  %p2282_p4 = pnand %p2281_p3, %p2275_p0 }
  0xed   :  { %1926 = vmatpush2.bf16.msra.mxu1 %v2261_v7 }
  0xee   :  { %1927 = vmatprep.subr.bf16.mxu1 %v2254_v9 }
  0xef   :  { %1887 = vmatpush2.bf16.msra.mxu0 %v2125_v11 }
  0xf0   :  { %1888 = vmatprep.subr.bf16.mxu0 %v2118_v16 }
  0xf1   :  { %1928 = vmatpush2.bf16.msra.mxu1 %v2253_v15 }
  0xf2   :  { %1929 = vmatprep.subr.bf16.mxu1 %v2246_v17 }
  0xf3   :  { %1889 = vmatpush2.bf16.msra.mxu0 %v2117_v22 }
  0xf4   :  { %1890 = vmatprep.subr.bf16.mxu0 %v2110_v24 }
  0xf5   :  { %1930 = vmatpush2.bf16.msra.mxu1 %v2245_v23 }
  0xf6   :  { %1931 = vmatprep.subr.bf16.mxu1 %v2238_v25 }
  0xf7   :  { %1891 = vmatpush2.bf16.msra.mxu0 %v2109_v32  ;;  %v319_v32 = vrot.slane %v3134_v55, %v318_v29 }
  0xf8   :  { %1892 = vmatprep.subr.bf16.mxu0 %v2102_v63 }
  0xf9   :  { %1932 = vmatpush2.bf16.msra.mxu1 %v2237_v33  ;;  %v323_v33 = vrot.slane %v3134_v55, %v322_v30 }
  0xfa   :  { %1933 = vmatprep.subr.bf16.mxu1 %v2230_v34 }
  0xfb   :  { %1893 = vmatpush2.bf16.msra.mxu0 %v2101_v38 }
  0xfc   :  { %1894 = vmatprep.subr.bf16.mxu0 %v2094_v40 }
  0xfd   :  { %1934 = vmatpush2.bf16.msra.mxu1 %v2229_v39 }
  0xfe   :  { %1935 = vmatprep.subr.bf16.mxu1 %v2222_v41 }
  0xff   :  { %1895 = vmatpush2.bf16.msra.mxu0 %v2093_v47  ;;  %v330_v47 = vsub.s32 7, %v2384_v44 }
 0x100   :  { %1896 = vmatprep.subr.bf16.mxu0 %v2086_v49 }
 0x101   :  { %1936 = vmatpush2.bf16.msra.mxu1 %v2221_v48  ;;  %v327_v48 = vrot.slane %v3134_v55, %v326_v46  ;;  %v331_v49 = vrot.slane %v3134_v55, %v330_v47 }
 0x102   :  { %1937 = vmatprep.subr.bf16.mxu1 %v2214_v50 }
 0x103   :  { %1897 = vmatpush2.bf16.msra.mxu0 %v2085_v51 }
 0x105   :  { %1938 = vmatpush2.bf16.msra.mxu1 %v2213_v54 }
 0x106   :  { %v1654_v59 = vpop.f32.mrf.mxu0  ;;  %1899 = vmatmul.mubr.bf16.vlgmr.msra.gmra.mxu0 %v2554_v28  ;;  %v311_v28 = vrot.slane %v3134_v55, %v310_v10 }
 0x107   :  { %v1655_v60 = vadd.f32 %v1654_v59, %v303_v57 }
 0x108   :  { %v1695_v61 = vpop.f32.mrf.mxu1  ;;  %1940 = vmatmul.mubr.bf16.vlgmr.msra.gmra.mxu1 %v2564_v31  ;;  %v1656_v62 = vpop.f32.mrf.mxu0 }
 0x109   :  { %v1696_v0 = vadd.f32 %v1695_v61, %v1655_v60  ;;  %v1657_v1 = vadd.f32 %v1656_v62, %v307_v58 }
 0x10a   :  { %v1697_v2 = vpop.f32.mrf.mxu1  ;;  %v1658_v3 = vpop.f32.mrf.mxu0 }
 0x10b   :  { %v1698_v4 = vadd.f32 %v1697_v2, %v1657_v1 }
 0x10c   :  { %v1699_v6 = vpop.f32.mrf.mxu1  ;;  %v1659_v7 = vpop.f32.mrf.mxu0 }
 0x10d   :  { %v1956_v8 = vcombine.low %v1696_v0, %v1698_v4 }
 0x10e   :  { %v1700_v9 = vpop.f32.mrf.mxu1 }
 0x10f   :  { %v1964_v25 = vrot.slane %v1956_v8, %v2399_v53 }
 0x146   :  { %v1736_v14 = vpop.f32.mrf.mxu0 }
 0x147   :  { %v1737_v31 = vadd.f32 %v1736_v14, %v311_v28 }
 0x148   :  { %v1777_v11 = vpop.f32.mrf.mxu1  ;;  %v1738_v15 = vpop.f32.mrf.mxu0 }
 0x149   :  { %v1778_v16 = vadd.f32 %v1777_v11, %v1737_v31  ;;  %v1739_v17 = vadd.f32 %v1738_v15, %v315_v13 }
 0x14a   :  { %v1779_v18 = vpop.f32.mrf.mxu1  ;;  %v1740_v19 = vpop.f32.mrf.mxu0 }
 0x14b   :  { %v1780_v20 = vadd.f32 %v1779_v18, %v1739_v17 }
 0x14c   :  { %v1781_v21 = vpop.f32.mrf.mxu1  ;;  %v1741_v22 = vpop.f32.mrf.mxu0 }
 0x14d   :  { %v1957_v23 = vcombine.low %v1778_v16, %v1780_v20 }
 0x14e   :  { %v1782_v24 = vpop.f32.mrf.mxu1 }
 0x14f   :  { %v1971_v26 = vrot.slane %v1957_v23, %v2399_v53 }
 0x151   :  { %v1972_v27 = vcombine.low %v1964_v25, %v1971_v26 }
 0x153   :  { %1992 = vst [vmem:[#allocation2] sm:$0xff] %v1972_v27 }
 0x186   :  { %v1818_v63 = vpop.f32.mrf.mxu0 }
 0x187   :  { %v1819_v34 = vadd.f32 %v1818_v63, %v319_v32 }
 0x188   :  { %v1859_v35 = vpop.f32.mrf.mxu1  ;;  %v1820_v36 = vpop.f32.mrf.mxu0 }
 0x189   :  { %v1860_v5 = vadd.f32 %v1859_v35, %v1819_v34  ;;  %v1821_v37 = vadd.f32 %v1820_v36, %v323_v33 }
 0x18a   :  { %v1861_v38 = vpop.f32.mrf.mxu1  ;;  %v1822_v39 = vpop.f32.mrf.mxu0 }
 0x18b   :  { %v1862_v40 = vadd.f32 %v1861_v38, %v1821_v37 }
 0x18c   :  { %v1863_v41 = vpop.f32.mrf.mxu1  ;;  %v1823_v42 = vpop.f32.mrf.mxu0 }
 0x18d   :  { %v1973_v43 = vcombine.low %v1860_v5, %v1862_v40 }
 0x18e   :  { %v1864_v45 = vpop.f32.mrf.mxu1 }
 0x18f   :  { %v1981_v55 = vrot.slane %v1973_v43, %v2399_v53 }
 0x1c6   :  { %v1900_v50 = vpop.f32.mrf.mxu0 }
 0x1c7   :  { %v1901_v51 = vadd.f32 %v1900_v50, %v327_v48 }
 0x1c8   :  { %v1941_v52 = vpop.f32.mrf.mxu1  ;;  %v1902_v54 = vpop.f32.mrf.mxu0 }
 0x1c9   :  { %v1903_v56 = vadd.f32 %v1902_v54, %v331_v49  ;;  %v1942_v59 = vadd.f32 %v1941_v52, %v1901_v51 }
 0x1ca   :  { %v1943_v57 = vpop.f32.mrf.mxu1  ;;  %v1904_v58 = vpop.f32.mrf.mxu0 }
 0x1cb   :  { %v1944_v60 = vadd.f32 %v1943_v57, %v1903_v56 }
 0x1cc   :  { %v1945_v61 = vpop.f32.mrf.mxu1  ;;  %v1905_v62 = vpop.f32.mrf.mxu0 }
 0x1cd   :  { %v1974_v44 = vcombine.low %v1942_v59, %v1944_v60 }
 0x1ce   :  { %v1946_v0 = vpop.f32.mrf.mxu1 }
 0x1cf   :  { %v1988_v1 = vrot.slane %v1974_v44, %v2399_v53 }
 0x1d1   :  { %v1989_v2 = vcombine.low %v1981_v55, %v1988_v1 }
 0x1d3   :  { %2000 = vst.msk [vmem:[#allocation2 + $0x8] sm:$0xff] %vm1999_vm6, %v1989_v2 }
 0x1d4   :  { %2285 = shalt.err (!%p2282_p4)
}
 0x1d5   :  { %2010 = dma.vmem_to_hbm [thread:$0]  %s2008_s2, 256, %s3163_s3, [#allocation3]  }
 0x1d6   :  { %2294 = dma.done.wait [#allocation3], 256  }
 0x1d7   :  { %2295 = vsyncadd [#allocation3], 4294967040 }
 0x1d8   :  { %2014 = vsyncpa [#allocation3], 1 }

</bundles_post_ra>
